<compile_context>
chip_gen: v7x
topology: tpu7x:2x2x1
jax: 0.10.0
libtpu: 0.0.40
codegen_flags: <defaults>
</compile_context>

<pallas_src>
import jax
import jax.numpy as jnp
from jax.experimental import pallas as pl
from jax.experimental.pallas import tpu as pltpu


_MIN_PALLAS_ELEMENTS = 64 * 1024  # below this, XLA fusion beats a kernel launch


def _silu_kernel(x_ref, o_ref):
    xf = x_ref[...].astype(jnp.float32)
    # Exact sigmoid with a single EUP transcendental per element:
    #   sigmoid(x) = 0.5 * (tanh(x / 2) + 1)
    sig = 0.5 * (jnp.tanh(0.5 * xf) + 1.0)
    o_ref[...] = (xf * sig).astype(o_ref.dtype)


def _row_multiple(dtype) -> int:
    """Sublane packing: rows per packed vreg tile (8 f32, 16 bf16, 32 int8)."""
    itemsize = jnp.dtype(dtype).itemsize
    return 8 * max(1, 4 // itemsize)


def _lane_dense_2d(n, row_mult):
    """Largest lane-dense factorization rows*cols == n with cols % 128 == 0
    and rows % row_mult == 0 (prefer wide slabs)."""
    for cols in (4096, 2048, 1024, 512, 256, 128):
        if n % cols == 0 and (n // cols) % row_mult == 0:
            return n // cols, cols
    return None


def _silu_2d(x2d: jax.Array) -> jax.Array:
    """Tiled elementwise silu on a lane-dense (rows, cols) slab."""
    rows, cols = x2d.shape
    itemsize = jnp.dtype(x2d.dtype).itemsize
    row_mult = _row_multiple(x2d.dtype)
    n = rows * cols

    # ~4 MiB per block.  With double-buffered input + output (~4x live) that
    # is ~16 MiB, covered by the explicit 48 MiB vmem limit below on every
    # generation (v5e/v6e: 128 MiB physical VMEM, v7x: 64 MiB).
    block_budget = 4 * 1024 * 1024
    max_rows = max(row_mult,
                   (block_budget // (cols * itemsize)) // row_mult * row_mult)
    tile_rows = min(rows, max_rows)

    # Keep at least 2 grid steps when possible so dimension_semantics
    # ("parallel",) can shard the grid across v7x's two TensorCores.
    if tile_rows >= rows and rows >= 2 * row_mult:
        half = (-(-(rows // 2) // row_mult)) * row_mult  # round_up(rows/2, row_mult)
        tile_rows = min(tile_rows, half)

    grid = (pl.cdiv(rows, tile_rows),)

    cost = pl.CostEstimate(
        flops=4 * n,
        transcendentals=n,            # one tanh per element
        bytes_accessed=2 * n * itemsize,
    )

    return pl.pallas_call(
        _silu_kernel,
        out_shape=jax.ShapeDtypeStruct((rows, cols), x2d.dtype),
        grid_spec=pltpu.PrefetchScalarGridSpec(
            num_scalar_prefetch=0,
            grid=grid,
            in_specs=[pl.BlockSpec((tile_rows, cols), lambda i: (i, 0))],
            out_specs=pl.BlockSpec((tile_rows, cols), lambda i: (i, 0)),
        ),
        compiler_params=pltpu.CompilerParams(
            dimension_semantics=("parallel",),
            vmem_limit_bytes=48 * 1024 * 1024,
        ),
        cost_estimate=cost,
    )(x2d)


def _jnp_silu(x: jax.Array) -> jax.Array:
    return x * jax.nn.sigmoid(x)


def _pallas_elementwise_silu(x: jax.Array) -> jax.Array:
    """Applies x * sigmoid(x) elementwise via a tiled Pallas kernel."""
    orig_shape = x.shape
    n = x.size
    row_mult = _row_multiple(x.dtype)

    if n < _MIN_PALLAS_ELEMENTS:
        # Tiny tensors: pallas_call launch + pipeline prologue dominates;
        # XLA fusion is faster and avoids a per-shape kernel compile.
        return _jnp_silu(x)

    fac = _lane_dense_2d(n, row_mult)
    if fac is not None:
        # No padding: flat reshape (free, contiguous) to a lane-dense slab.
        rows, cols = fac
        out2d = _silu_2d(jnp.reshape(x, (rows, cols)))
        return jnp.reshape(out2d, orig_shape)

    # Ragged size: run the kernel on the aligned prefix and compute the short
    # (< 128*row_mult element) tail with plain jnp -- no pad + slice
    # full-array HBM copies.
    # TODO(synk): handle the ragged tail with a masked edge block in-kernel to
    # also avoid the final concatenate copy.
    chunk = 128 * row_mult
    main = n - (n % chunk)
    x_flat = jnp.reshape(x, (n,))
    head = _silu_2d(jnp.reshape(x_flat[:main], (main // 128, 128)))
    tail = _jnp_silu(x_flat[main:])
    out_flat = jnp.concatenate([jnp.reshape(head, (main,)), tail])
    return jnp.reshape(out_flat, orig_shape)


class Lambda:
    """JAX/Pallas equivalent of msanii's Lambda module.

    Parameter-free: forward(*args) == fn(*args).
    """

    def __init__(self, fn):
        self.fn = fn

    def __call__(self, *args):
        return self.fn(*args)


if __name__ == "__main__":
    key = jax.random.PRNGKey(0)
    module = Lambda(_pallas_elementwise_silu)

    # Small NCHW input consistent with conv-style usage in the source repo
    # (below the Pallas threshold -> fused jnp path, identical semantics).
    x_small = jax.random.normal(key, (2, 4, 16, 16), dtype=jnp.float32)
    y_small = jax.block_until_ready(module(x_small))

    # Larger input that exercises the Pallas kernel path (>= 2 grid steps).
    k1, k2 = jax.random.split(key)
    x_big = jax.random.normal(k1, (2, 4, 128, 128), dtype=jnp.float32)
    y_big = jax.block_until_ready(module(x_big))

    # Ragged flat size exercising the aligned-prefix + jnp-tail path.
    x_ragged = jax.random.normal(k2, (66600,), dtype=jnp.float32)
    y_ragged = jax.block_until_ready(module(x_ragged))

    # Correctness check against a pure-JAX reference of the same fn.
    # The kernel uses the exact tanh-form sigmoid, so errors are at the level
    # of f32 transcendental rounding (typically < 1e-6).
    for xv, yv in ((x_small, y_small), (x_big, y_big), (x_ragged, y_ragged)):
        ref = xv * jax.nn.sigmoid(xv)
        assert yv.shape == xv.shape and yv.dtype == xv.dtype
        assert jnp.max(jnp.abs(yv - ref)) < 1e-4

    print("KERNEL_OK")
</pallas_src>

<mosaic_0001>
module attributes {stable_mosaic.version = 11 : i64} {
  func.func @_silu_kernel(%arg0: i32, %arg1: memref<16x4096xf32, #tpu.memory_space<vmem>>, %arg2: memref<16x4096xf32, #tpu.memory_space<vmem>>) attributes {dimension_semantics = [#tpu.dimension_semantics<parallel>], iteration_bounds = array<i64: 2>, scalar_prefetch = 0 : i64, scratch_operands = 0 : i64, tpu.core_type = #tpu.core_type<tc>, window_params = [{transform_indices = @transform_0, window_bounds = array<i64: 16, 4096>}, {transform_indices = @transform_1, window_bounds = array<i64: 16, 4096>}]} {
    %c0 = arith.constant 0 : index
    %c0_0 = arith.constant 0 : index
    %0 = vector.load %arg1[%c0, %c0_0] : memref<16x4096xf32, #tpu.memory_space<vmem>>, vector<16x4096xf32>
    %cst = arith.constant 5.000000e-01 : f32
    %1 = vector.broadcast %cst : f32 to vector<16x4096xf32>
    %2 = arith.mulf %1, %0 : vector<16x4096xf32>
    %3 = math.tanh %2 : vector<16x4096xf32>
    %cst_1 = arith.constant 1.000000e+00 : f32
    %4 = vector.broadcast %cst_1 : f32 to vector<16x4096xf32>
    %5 = arith.addf %3, %4 : vector<16x4096xf32>
    %cst_2 = arith.constant 5.000000e-01 : f32
    %6 = vector.broadcast %cst_2 : f32 to vector<16x4096xf32>
    %7 = arith.mulf %6, %5 : vector<16x4096xf32>
    %8 = arith.mulf %0, %7 : vector<16x4096xf32>
    %c0_3 = arith.constant 0 : index
    %c0_4 = arith.constant 0 : index
    %9 = vector.load %arg2[%c0_3, %c0_4] : memref<16x4096xf32, #tpu.memory_space<vmem>>, vector<16x4096xf32>
    tpu.vector_store %arg2[%c0_3, %c0_4], %8 {strides = array<i32>} : memref<16x4096xf32, #tpu.memory_space<vmem>>, vector<16x4096xf32>,
    return
  }
  func.func @transform_0(%arg0: i32) -> (i32, i32) {
    %c0_i32 = arith.constant 0 : i32
    %c0_i32_0 = arith.constant 0 : i32
    return %arg0, %c0_i32 : i32, i32
  }
  func.func @transform_1(%arg0: i32) -> (i32, i32) {
    %c0_i32 = arith.constant 0 : i32
    %c0_i32_0 = arith.constant 0 : i32
    return %arg0, %c0_i32 : i32, i32
  }
}

</mosaic_0001>

<bundles_post_ra>
// kernel: tpu_custom_call.1
= control target key start
LH: loop header
LB: loop body
LE: loop exit
PB: predicated region body
PF: predicated region fallthrough
CT: control target
= control target key end

     0   :  { %6 = vsyncpa [#allocation3], 0  ;;  %s1643_s0 = inlined_call_operand.hbm [shape: f32[32,4096], index: 0, kind: input, shape index: {}]   ;;  %s1644_s1 = inlined_call_operand.hbm [shape: f32[32,4096], index: 1, kind: output, shape index: {}]  }
   0x1   :  { %8 = vsyncpa [#allocation3 + $0x1], 0 }
   0x2   :  { %9 = vsyncpa [#allocation4], 0 }
   0x3   :  { %11 = vsyncpa [#allocation4 + $0x1], 0  ;;  %s986_s6 = smov 0   ;;  %s988_s7 = smov 0  }
   0x4   :  { %s990_s8 = smov 0   ;;  %s992_s9 = smov 0  }
   0x5 LB: > { %s1007_s10 = sadd.s32 4294967295, %s968_s9   ;;  %s674_s11 = sadd.s32 4294967294, %s968_s9   ;;  %s968_s9 = sphi %s992_s9, %s1732_s9   ;;  %s964_s8 = sphi %s990_s8, %s1731_s8   ;;  %s960_s7 = sphi %s988_s7, %s1730_s7   ;;  %s956_s6 = sphi %s986_s6, %s1729_s6  }
   0x6   : > { %s1011_s12 = sadd.s32 1, %s968_s9   ;;  %s24_s13 = sadd.s32 1, %s964_s8 }
   0x7   : > { %s21_s14 = ssub.s32 %s968_s9, %s1011_s12  ;;  %p31_p0 = scmp.ne.s32.totalorder %s964_s8, %s960_s7 }
   0x8   : > { %p22_p1 = scmp.eq.s32.totalorder %s21_s14, 0  ;;  %p32_p2 = scmp.eq.s32.totalorder %s968_s9, 0 }
   0x9   : > { %p37_p3 = scmp.ne.s32.totalorder %s960_s7, %s956_s6  ;;  %p38_p4 = scmp.eq.s32.totalorder %s1007_s10, 0 }
   0xa   : > { %s1023_s15 = scalar_select %p22_p1, %s964_s8, %s24_s13  }
   0xb   : > { %p1025_p5 = por %p32_p2, %p31_p0  ;;  %p1029_p6 = por %p38_p4, %p37_p3 }
   0xc   : > { %p61_p7 = scmp.eq.s32.totalorder %s1007_s10, 1  ;;  %p67_p8 = scmp.eq.s32.totalorder %s674_s11, 1 }
   0xd   : > { %p706_p10 = scmp.lt.s32.totalorder %s968_s9, 2  ;;  %s87_s20 = sand.u32 1, %s964_s8  }
   0xe   : > { %p1036_p11 = por %p61_p7, %p31_p0  ;;  %p1040_p12 = por %p67_p8, %p37_p3 }
   0xf   : > { %s691_s21 = sshll.u32 %s968_s9, 13  ;;  %s677_s22 = sshll.u32 %s87_s20, 9 }
  0x10   : > { %s1669_s18 = scalar_select %p1036_p11, 1, 0 }
  0x11   : > { %s1670_s19 = scalar_select %p1040_p12, 1, 0 }
  0x12   : > { %s1049_s25 = scalar_lea.hbm %s1643_s0, %s691_s21  ;;  %s91_s26 = scalar_lea.vmem [#allocation2], %s677_s22 }
  0x13   : > { %s99_s27 = sshll.u32 %s91_s26, 4  ;;  %p1053_p13 = pnand %p706_p10, %p1025_p5  ;;  %s1057_s27 = int_to_ptr.vmem [resolvable:$true] %s99_s27 }
  0x14   : > { %s1059_s29 = scalar_lea.sflag [#allocation3], %s87_s20  ;;  %s872_s30 = scalar_lea.hbm %s1049_s25, 8192 }
  0x15   : > { %p873_p0 = scmp.ne.s32.totalorder %s1049_s25, %s872_s30  ;;  %p874_p1 = pneg %p1053_p13 }
  0x16   : > { %s877_s4 = scalar_lea.hbm %s1643_s0, 16384  ;;  %p878_p4 = scmp.lt.u32.totalorder %s1049_s25, %s1643_s0 }
  0x17   : > { %p875_p2 = pnand %p874_p1, %p873_p0  ;;  %p879_p5 = scmp.lt.u32.totalorder %s877_s4, %s872_s30 }
  0x18   : > { %p881_p8 = scmp.lt.u32.totalorder %s872_s30, %s1049_s25 }
  0x19   : > { %p876_p3 = pneg %p875_p2  ;;  %p880_p7 = por %p879_p5, %p878_p4 }
  0x1b   : > { %p882_p10 = por %p881_p8, %p880_p7 }
  0x1d   : > { %p883_p9 = pnand %p882_p10, %p876_p3 }
  0x1f   : > { %886 = shalt.err (!%p883_p9)
}
  0x20   : > { %s887_s13 = scalar_lea.vmem %s1057_s27, 8192  ;;  %s970_s14 = smov [#allocation2]  }
  0x21   : > { %p888_p0 = scmp.ne.s32.totalorder %s1057_s27, %s887_s13  ;;  %s892_s16 = sshll.u32 %s970_s14, 4  ;;  %s893_s16 = int_to_ptr.vmem [resolvable:$false] %s892_s16 }
  0x22   : > { %s894_s20 = scalar_lea.vmem %s893_s16, 16384  ;;  %p895_p11 = scmp.lt.s32.totalorder %s1057_s27, %s893_s16 }
  0x23   : > { %p890_p2 = pnand %p888_p0, %p874_p1  ;;  %p896_p4 = scmp.lt.s32.totalorder %s894_s20, %s887_s13 }
  0x25   : > { %p891_p12 = pneg %p890_p2  ;;  %p897_p5 = por %p896_p4, %p895_p11 }
  0x27   : > { %p898_p7 = pnand %p897_p5, %p891_p12 }
  0x29   : > { %901 = shalt.err (!%p898_p7)
}
  0x2a   : > { %s971_s21 = smov 4096   ;;  %s972_s22 = smov 256  }
  0x2b   : > { %701 = dma.hbm_to_vmem [thread:$0]  (!%p1053_p13), %s1049_s25, 8192, %s1057_s27, %s1059_s29, %s971_s21, %s971_s21, %s972_s22  }
  0x2c   : > { %p681_p9 = scmp.ge.s32.totalorder %s968_s9, 1  ;;  %p107_p1 = scmp.lt.s32.totalorder %s968_s9, 3 }
  0x2e   : > { %p108_p3 = pnand %p681_p9, %p107_p1 }
  0x30   : > { %111 = sbr.rel (%p108_p3) target bundleno = 167 (0xa7), region = 24 }
  0x37   : > { %s1090_s23 = sand.u32 1, %s960_s7  }
  0x38   : > { %s682_s24 = sshll.u32 %s1090_s23, 9  ;;  %s114_s26 = scalar_lea.sflag [#allocation3], %s1090_s23 }
  0x39   : > { %s1096_s30 = scalar_lea.vmem [#allocation2], %s682_s24 }
  0x3a   : > { %947 = dma.done.wait (%p1029_p6), %s114_s26, 8192  }
  0x3b   : > { %949 = vsyncadd (%p1029_p6), %s114_s26, 4294959104  ;;  %v1103_v0 = vld [vmem:[%s1096_s30] sm:$0xff]  ;;  %v1106_v1 = vld [vmem:[%s1096_s30 + $0x8] sm:$0xff]  ;;  %s1360_s17 = scalar_lea.vmem [#allocation5], %s682_s24  ;;  %s693_s25 = sshll.u32 %s1007_s10, 13 }
  0x3c   : > { %v1109_v2 = vld [vmem:[%s1096_s30 + $0x10] sm:$0xff]  ;;  %v202_v3 = vmul.f32 0.5, %v1103_v0  ;;  %v203_v4 = vmul.f32 0.5, %v1106_v1  ;;  %v1115_v6 = vld [vmem:[%s1096_s30 + $0x18] sm:$0xff]  ;;  %v1118_v7 = vld [vmem:[%s1096_s30 + $0x20] sm:$0xff]  ;;  %s601_s27 = sshll.u32 %s1360_s17, 4  ;;  %s1593_s2 = scalar_lea.hbm %s1644_s1, %s693_s25  ;;  %s1595_s27 = int_to_ptr.vmem [resolvable:$true] %s601_s27 }
  0x3d   : > { %v204_v5 = vmul.f32 0.5, %v1109_v2  ;;  %v1121_v8 = vld [vmem:[%s1096_s30 + $0x28] sm:$0xff]  ;;  %v205_v9 = vmul.f32 0.5, %v1115_v6  ;;  %v206_v10 = vmul.f32 0.5, %v1118_v7  ;;  %v1127_v12 = vld [vmem:[%s1096_s30 + $0x30] sm:$0xff]  ;;  %v1130_v13 = vld [vmem:[%s1096_s30 + $0x38] sm:$0xff] }
  0x3e   : > { %v207_v11 = vmul.f32 0.5, %v1121_v8  ;;  %v1133_v14 = vld [vmem:[%s1096_s30 + $0x40] sm:$0xff]  ;;  %744 = vtanh.f32 %v202_v3  ;;  %v208_v15 = vmul.f32 0.5, %v1127_v12  ;;  %v209_v16 = vmul.f32 0.5, %v1130_v13  ;;  %v1139_v18 = vld [vmem:[%s1096_s30 + $0x48] sm:$0xff]  ;;  %v1142_v19 = vld [vmem:[%s1096_s30 + $0x50] sm:$0xff] }
  0x3f   : > { %v210_v17 = vmul.f32 0.5, %v1133_v14  ;;  %v1145_v20 = vld [vmem:[%s1096_s30 + $0x58] sm:$0xff]  ;;  %746 = vtanh.f32 %v203_v4  ;;  %v211_v21 = vmul.f32 0.5, %v1139_v18  ;;  %v212_v22 = vmul.f32 0.5, %v1142_v19  ;;  %v1153_v24 = vld [vmem:[%s1096_s30 + $0x60] sm:$0xff]  ;;  %v1156_v25 = vld [vmem:[%s1096_s30 + $0x68] sm:$0xff] }
  0x40   : > { %v1150_v23 = vmul.f32 0.5, %v1145_v20  ;;  %v1159_v26 = vld [vmem:[%s1096_s30 + $0x70] sm:$0xff]  ;;  %748 = vtanh.f32 %v204_v5  ;;  %v1162_v27 = vmul.f32 0.5, %v1153_v24  ;;  %v1165_v28 = vmul.f32 0.5, %v1156_v25  ;;  %v1171_v30 = vld [vmem:[%s1096_s30 + $0x78] sm:$0xff]  ;;  %v1174_v31 = vld [vmem:[%s1096_s30 + $0x80] sm:$0xff] }
  0x41   : > { %v1168_v29 = vmul.f32 0.5, %v1159_v26  ;;  %v1177_v32 = vld [vmem:[%s1096_s30 + $0x88] sm:$0xff]  ;;  %750 = vtanh.f32 %v205_v9  ;;  %v1180_v33 = vmul.f32 0.5, %v1171_v30  ;;  %v1183_v34 = vmul.f32 0.5, %v1174_v31  ;;  %v1189_v36 = vld [vmem:[%s1096_s30 + $0x90] sm:$0xff]  ;;  %v1192_v37 = vld [vmem:[%s1096_s30 + $0x98] sm:$0xff] }
  0x42   : > { %v1186_v35 = vmul.f32 0.5, %v1177_v32  ;;  %v1195_v38 = vld [vmem:[%s1096_s30 + $0xa0] sm:$0xff]  ;;  %752 = vtanh.f32 %v206_v10  ;;  %v1198_v39 = vmul.f32 0.5, %v1189_v36  ;;  %v1201_v40 = vmul.f32 0.5, %v1192_v37  ;;  %v1207_v42 = vld [vmem:[%s1096_s30 + $0xa8] sm:$0xff]  ;;  %v1210_v43 = vld [vmem:[%s1096_s30 + $0xb0] sm:$0xff] }
  0x43   : > { %v1204_v41 = vmul.f32 0.5, %v1195_v38  ;;  %v1213_v44 = vld [vmem:[%s1096_s30 + $0xb8] sm:$0xff]  ;;  %754 = vtanh.f32 %v207_v11  ;;  %v1216_v45 = vmul.f32 0.5, %v1207_v42  ;;  %v1219_v46 = vmul.f32 0.5, %v1210_v43  ;;  %v1225_v48 = vld [vmem:[%s1096_s30 + $0xc0] sm:$0xff]  ;;  %v1228_v49 = vld [vmem:[%s1096_s30 + $0xc8] sm:$0xff] }
  0x44   : > { %1672 = vst [vmem:[#allocation8_spill] sm:$0xff] %v1213_v44  ;;  %v1222_v47 = vmul.f32 0.5, %v1213_v44  ;;  %1673 = vst [vmem:[#allocation9_spill] sm:$0xff] %v1225_v48  ;;  %v1231_v50 = vld [vmem:[%s1096_s30 + $0xd0] sm:$0xff]  ;;  %756 = vtanh.f32 %v208_v15  ;;  %v1234_v51 = vmul.f32 0.5, %v1225_v48  ;;  %v1237_v52 = vmul.f32 0.5, %v1228_v49 }
  0x45   : > { %1674 = vst [vmem:[#allocation10_spill] sm:$0xff] %v1228_v49  ;;  %1675 = vst [vmem:[#allocation11_spill] sm:$0xff] %v1231_v50  ;;  %v1240_v53 = vmul.f32 0.5, %v1231_v50  ;;  %v1243_v54 = vld [vmem:[%s1096_s30 + $0xd8] sm:$0xff]  ;;  %v1246_v55 = vld [vmem:[%s1096_s30 + $0xe0] sm:$0xff]  ;;  %758 = vtanh.f32 %v209_v16  ;;  %s587_s10 = scalar_lea.sflag [#allocation4], %s1090_s23 }
  0x46   : > { %1676 = vst [vmem:[#allocation12_spill] sm:$0xff] %v1243_v54  ;;  %1677 = vst [vmem:[#allocation13_spill] sm:$0xff] %v1246_v55  ;;  %v1249_v56 = vld [vmem:[%s1096_s30 + $0xe8] sm:$0xff]  ;;  %v1252_v57 = vmul.f32 0.5, %v1243_v54  ;;  %v1255_v58 = vmul.f32 0.5, %v1246_v55  ;;  %v1261_v60 = vld [vmem:[%s1096_s30 + $0xf0] sm:$0xff]  ;;  %760 = vtanh.f32 %v210_v17 }
  0x47   : > { %1678 = vst [vmem:[#allocation14_spill] sm:$0xff] %v1249_v56  ;;  %v1258_v59 = vmul.f32 0.5, %v1249_v56  ;;  %1679 = vst [vmem:[#allocation15_spill] sm:$0xff] %v1261_v60  ;;  %v1264_v61 = vld [vmem:[%s1096_s30 + $0xf8] sm:$0xff]  ;;  %v1267_v62 = vld [vmem:[%s1096_s30 + $0x100] sm:$0xff]  ;;  %v1270_v63 = vmul.f32 0.5, %v1261_v60  ;;  %762 = vtanh.f32 %v211_v21 }
  0x48   : > { %1680 = vst [vmem:[#allocation16_spill] sm:$0xff] %v1264_v61  ;;  %1681 = vst [vmem:[#allocation17_spill] sm:$0xff] %v1267_v62  ;;  %v1273_v3 = vmul.f32 0.5, %v1264_v61  ;;  %v1276_v4 = vmul.f32 0.5, %v1267_v62  ;;  %v1279_v5 = vld [vmem:[%s1096_s30 + $0x108] sm:$0xff]  ;;  %v1282_v9 = vld [vmem:[%s1096_s30 + $0x110] sm:$0xff]  ;;  %v745_v60 = vpop.eup %744  ;;  %764 = vtanh.f32 %v212_v22 }
  0x49   : > { %1682 = vst [vmem:[#allocation18_spill] sm:$0xff] %v1279_v5  ;;  %1683 = vst [vmem:[#allocation19_spill] sm:$0xff] %v1282_v9  ;;  %v1285_v10 = vld [vmem:[%s1096_s30 + $0x118] sm:$0xff]  ;;  %v1288_v11 = vmul.f32 0.5, %v1279_v5  ;;  %v1291_v15 = vmul.f32 0.5, %v1282_v9  ;;  %v1297_v17 = vld [vmem:[%s1096_s30 + $0x120] sm:$0xff]  ;;  %v747_v54 = vpop.eup %746  ;;  %766 = vtanh.f32 %v1150_v23 }
  0x4a   : > { %1684 = vst [vmem:[#allocation20_spill] sm:$0xff] %v1285_v10  ;;  %v1294_v16 = vmul.f32 0.5, %v1285_v10  ;;  %1685 = vst [vmem:[#allocation21_spill] sm:$0xff] %v1297_v17  ;;  %v1300_v62 = vld [vmem:[%s1096_s30 + $0x128] sm:$0xff]  ;;  %v1303_v61 = vld [vmem:[%s1096_s30 + $0x130] sm:$0xff]  ;;  %v1306_v21 = vmul.f32 0.5, %v1297_v17  ;;  %v749_v48 = vpop.eup %748  ;;  %768 = vtanh.f32 %v1162_v27 }
  0x4b   : > { %1686 = vst [vmem:[#allocation22_spill] sm:$0xff] %v1300_v62  ;;  %1687 = vst [vmem:[#allocation23_spill] sm:$0xff] %v1303_v61  ;;  %v1309_v9 = vmul.f32 0.5, %v1300_v62  ;;  %v1312_v10 = vmul.f32 0.5, %v1303_v61  ;;  %v1315_v5 = vld [vmem:[%s1096_s30 + $0x138] sm:$0xff]  ;;  %v1318_v56 = vld [vmem:[%s1096_s30 + $0x140] sm:$0xff]  ;;  %770 = vtanh.f32 %v1165_v28 }
  0x4c   : > { %1690 = vst [vmem:[#allocation26_spill] sm:$0xff] %v1315_v5  ;;  %1691 = vst [vmem:[#allocation27_spill] sm:$0xff] %v1318_v56  ;;  %v1321_v55 = vld [vmem:[%s1096_s30 + $0x148] sm:$0xff]  ;;  %v330_v50 = vadd.f32 1.0, %v745_v60  ;;  %v1325_v22 = vmul.f32 0.5, %v1315_v5  ;;  %v1328_v17 = vmul.f32 0.5, %v1318_v56  ;;  %v751_v5 = vpop.eup %750  ;;  %772 = vtanh.f32 %v1168_v29 }
  0x4d   : > { %1688 = vst [vmem:[#allocation24_spill] sm:$0xff] %v1309_v9  ;;  %1689 = vst [vmem:[#allocation25_spill] sm:$0xff] %v1312_v10  ;;  %v1331_v62 = vld [vmem:[%s1096_s30 + $0x150] sm:$0xff]  ;;  %v1334_v61 = vld [vmem:[%s1096_s30 + $0x158] sm:$0xff]  ;;  %v331_v10 = vadd.f32 1.0, %v747_v54  ;;  %v1341_v60 = vmul.f32 0.5, %v1321_v55  ;;  %v753_v44 = vpop.eup %752  ;;  %774 = vtanh.f32 %v1180_v33 }
  0x4e   : > { %1692 = vst [vmem:[#allocation28_spill] sm:$0xff] %v1321_v55  ;;  %1693 = vst [vmem:[#allocation29_spill] sm:$0xff] %v1325_v22  ;;  %v1337_v49 = vld [vmem:[%s1096_s30 + $0x160] sm:$0xff]  ;;  %v1344_v23 = vmul.f32 0.5, %v1331_v62  ;;  %v394_v22 = vmul.f32 0.5, %v330_v50  ;;  %v332_v56 = vadd.f32 1.0, %v749_v48  ;;  %v755_v55 = vpop.eup %754  ;;  %776 = vtanh.f32 %v1183_v34 }
  0x4f   : > { %1694 = vst [vmem:[#allocation30_spill] sm:$0xff] %v1328_v17  ;;  %1695 = vst [vmem:[#allocation31_spill] sm:$0xff] %v1331_v62  ;;  %v1348_v17 = vmul.f32 0.5, %v1334_v61  ;;  %v395_v9 = vmul.f32 0.5, %v331_v10  ;;  %v333_v54 = vadd.f32 1.0, %v751_v5  ;;  %v1352_v27 = vmul.f32 0.5, %v1337_v49  ;;  %v757_v28 = vpop.eup %756 }
  0x50   : > { %1696 = vst [vmem:[#allocation32_spill] sm:$0xff] %v1334_v61  ;;  %1697 = vst [vmem:[#allocation33_spill] sm:$0xff] %v1344_v23  ;;  %v458_v62 = vmul.f32 %v394_v22, %v1103_v0  ;;  %v396_v23 = vmul.f32 0.5, %v332_v56  ;;  %v334_v50 = vadd.f32 1.0, %v753_v44  ;;  %v759_v5 = vpop.eup %758  ;;  %v336_v33 = vadd.f32 1.0, %v757_v28  ;;  %s902_s3 = scalar_lea.vmem %s1595_s27, 8192 }
  0x51   : > { %1698 = vst [vmem:[#allocation34_spill] sm:$0xff] %v1348_v17  ;;  %v459_v48 = vmul.f32 %v395_v9, %v1106_v1  ;;  %v397_v61 = vmul.f32 0.5, %v333_v54  ;;  %v335_v17 = vadd.f32 1.0, %v755_v55  ;;  %778 = vtanh.f32 %v1186_v35  ;;  %v761_v1 = vpop.eup %760  ;;  %p903_p6 = scmp.ne.s32.totalorder %s1595_s27, %s902_s3  ;;  %p1726_p11 = scmp.ne.s32.totalorder %s1669_s18, 0 }
  0x52   : > { %522 = vst [vmem:[%s1360_s17] sm:$0xff] %v458_v62  ;;  %v460_v0 = vmul.f32 %v396_v23, %v1109_v2  ;;  %v398_v29 = vmul.f32 0.5, %v334_v50  ;;  %v337_v55 = vadd.f32 1.0, %v759_v5  ;;  %780 = vtanh.f32 %v1198_v39  ;;  %v763_v56 = vpop.eup %762  ;;  %s973_s4 = smov [#allocation5]  }
  0x53   : > { %523 = vst [vmem:[%s1360_s17 + $0x8] sm:$0xff] %v459_v48  ;;  %v461_v44 = vmul.f32 %v397_v61, %v1115_v6  ;;  %v399_v34 = vmul.f32 0.5, %v335_v17  ;;  %v400_v9 = vmul.f32 0.5, %v336_v33  ;;  %v338_v2 = vadd.f32 1.0, %v761_v1  ;;  %v765_v10 = vpop.eup %764  ;;  %p904_p12 = pnand %p903_p6, %p1726_p11  ;;  %s906_s5 = sshll.u32 %s973_s4, 4  ;;  %s907_s5 = int_to_ptr.vmem [resolvable:$false] %s906_s5 }
  0x54   : > { %524 = vst [vmem:[%s1360_s17 + $0x10] sm:$0xff] %v460_v0  ;;  %v462_v62 = vmul.f32 %v398_v29, %v1118_v7  ;;  %782 = vtanh.f32 %v1201_v40  ;;  %v401_v22 = vmul.f32 0.5, %v337_v55  ;;  %v339_v6 = vadd.f32 1.0, %v763_v56  ;;  %v767_v61 = vpop.eup %766  ;;  %s908_s11 = scalar_lea.vmem %s907_s5, 16384  ;;  %p909_p8 = scmp.lt.s32.totalorder %s1595_s27, %s907_s5 }
  0x55   : > { %525 = vst [vmem:[%s1360_s17 + $0x18] sm:$0xff] %v461_v44  ;;  %v463_v35 = vmul.f32 %v399_v34, %v1121_v8  ;;  %784 = vtanh.f32 %v1204_v41  ;;  %v464_v39 = vmul.f32 %v400_v9, %v1127_v12  ;;  %v402_v17 = vmul.f32 0.5, %v338_v2  ;;  %v769_v23 = vpop.eup %768  ;;  %p905_p13 = pneg %p904_p12  ;;  %p910_p10 = scmp.lt.s32.totalorder %s908_s11, %s902_s3 }
  0x56   : > { %526 = vst [vmem:[%s1360_s17 + $0x20] sm:$0xff] %v462_v62  ;;  %v340_v7 = vadd.f32 1.0, %v765_v10  ;;  %786 = vtanh.f32 %v1216_v45  ;;  %v465_v40 = vmul.f32 %v401_v22, %v1130_v13  ;;  %v403_v54 = vmul.f32 0.5, %v339_v6  ;;  %v771_v50 = vpop.eup %770 }
  0x57   : > { %527 = vst [vmem:[%s1360_s17 + $0x28] sm:$0xff] %v463_v35  ;;  %v341_v8 = vadd.f32 1.0, %v767_v61  ;;  %788 = vtanh.f32 %v1219_v46  ;;  %528 = vst [vmem:[%s1360_s17 + $0x30] sm:$0xff] %v464_v39  ;;  %v466_v41 = vmul.f32 %v402_v17, %v1133_v14  ;;  %v342_v12 = vadd.f32 1.0, %v769_v23  ;;  %v773_v48 = vpop.eup %772  ;;  %p911_p0 = por %p910_p10, %p909_p8 }
  0x58   : > { %v404_v28 = vmul.f32 0.5, %v340_v7  ;;  %790 = vtanh.f32 %v1222_v47  ;;  %529 = vst [vmem:[%s1360_s17 + $0x38] sm:$0xff] %v465_v40  ;;  %v467_v45 = vmul.f32 %v403_v54, %v1139_v18  ;;  %v343_v13 = vadd.f32 1.0, %v771_v50  ;;  %v775_v0 = vpop.eup %774 }
  0x59   : > { %v405_v5 = vmul.f32 0.5, %v341_v8  ;;  %792 = vtanh.f32 %v1234_v51  ;;  %530 = vst [vmem:[%s1360_s17 + $0x40] sm:$0xff] %v466_v41  ;;  %v406_v29 = vmul.f32 0.5, %v342_v12  ;;  %v344_v14 = vadd.f32 1.0, %v773_v48  ;;  %v777_v33 = vpop.eup %776  ;;  %v1699_v12 = vld [vmem:[#allocation24_spill] sm:$0xff]  ;;  %p912_p2 = pnand %p911_p0, %p905_p13 }
  0x5a   : > { %v468_v46 = vmul.f32 %v404_v28, %v1142_v19  ;;  %794 = vtanh.f32 %v1237_v52  ;;  %531 = vst [vmem:[%s1360_s17 + $0x48] sm:$0xff] %v467_v45  ;;  %v407_v1 = vmul.f32 0.5, %v343_v13  ;;  %v345_v18 = vadd.f32 1.0, %v775_v0  ;;  %v1701_v13 = vld [vmem:[#allocation25_spill] sm:$0xff] }
  0x5b   : > { %v469_v47 = vmul.f32 %v405_v5, %v1145_v20  ;;  %796 = vtanh.f32 %v1240_v53  ;;  %v779_v44 = vpop.eup %778  ;;  %v470_v51 = vmul.f32 %v406_v29, %v1153_v24  ;;  %v408_v34 = vmul.f32 0.5, %v344_v14  ;;  %v1703_v14 = vld [vmem:[#allocation29_spill] sm:$0xff] }
  0x5c   : > { %532 = vst [vmem:[%s1360_s17 + $0x50] sm:$0xff] %v468_v46  ;;  %v346_v19 = vadd.f32 1.0, %v777_v33  ;;  %798 = vtanh.f32 %v1252_v57  ;;  %v781_v55 = vpop.eup %780  ;;  %v471_v52 = vmul.f32 %v407_v1, %v1156_v25  ;;  %v409_v56 = vmul.f32 0.5, %v345_v18 }
  0x5d   : > { %533 = vst [vmem:[%s1360_s17 + $0x58] sm:$0xff] %v469_v47  ;;  %v347_v20 = vadd.f32 1.0, %v779_v44  ;;  %800 = vtanh.f32 %v1255_v58  ;;  %534 = vst [vmem:[%s1360_s17 + $0x60] sm:$0xff] %v470_v51  ;;  %v472_v53 = vmul.f32 %v408_v34, %v1159_v26  ;;  %v348_v24 = vadd.f32 1.0, %v781_v55  ;;  %v1704_v47 = vld [vmem:[#allocation10_spill] sm:$0xff] }
  0x5e   : > { %v783_v62 = vpop.eup %782  ;;  %v410_v9 = vmul.f32 0.5, %v346_v19  ;;  %802 = vtanh.f32 %v1258_v59  ;;  %535 = vst [vmem:[%s1360_s17 + $0x68] sm:$0xff] %v471_v52  ;;  %v473_v57 = vmul.f32 %v409_v56, %v1171_v30  ;;  %v1705_v51 = vld [vmem:[#allocation30_spill] sm:$0xff]  ;;  %v1706_v19 = vld [vmem:[#allocation11_spill] sm:$0xff] }
  0x5f   : > { %v785_v2 = vpop.eup %784  ;;  %v411_v10 = vmul.f32 0.5, %v347_v20  ;;  %v349_v25 = vadd.f32 1.0, %v783_v62  ;;  %804 = vtanh.f32 %v1270_v63  ;;  %536 = vst [vmem:[%s1360_s17 + $0x70] sm:$0xff] %v472_v53  ;;  %v412_v22 = vmul.f32 0.5, %v348_v24  ;;  %v1707_v62 = vld [vmem:[#allocation12_spill] sm:$0xff] }
  0x60   : > { %v787_v35 = vpop.eup %786  ;;  %v474_v58 = vmul.f32 %v410_v9, %v1174_v31  ;;  %v350_v26 = vadd.f32 1.0, %v785_v2  ;;  %806 = vtanh.f32 %v1273_v3  ;;  %537 = vst [vmem:[%s1360_s17 + $0x78] sm:$0xff] %v473_v57  ;;  %v1708_v2 = vld [vmem:[#allocation33_spill] sm:$0xff] }
  0x61   : > { %v789_v6 = vpop.eup %788  ;;  %v475_v59 = vmul.f32 %v411_v10, %v1177_v32  ;;  %v413_v61 = vmul.f32 0.5, %v349_v25  ;;  %v351_v30 = vadd.f32 1.0, %v787_v35  ;;  %808 = vtanh.f32 %v1276_v4  ;;  %v1441_v57 = vld [vmem:[%s1096_s30 + $0x168] sm:$0xff] }
  0x62   : > { %v791_v39 = vpop.eup %790  ;;  %538 = vst [vmem:[%s1360_s17 + $0x80] sm:$0xff] %v474_v58  ;;  %v476_v63 = vmul.f32 %v412_v22, %v1189_v36  ;;  %v414_v17 = vmul.f32 0.5, %v350_v26  ;;  %v352_v31 = vadd.f32 1.0, %v789_v6  ;;  %810 = vtanh.f32 %v1288_v11  ;;  %v1709_v25 = vld [vmem:[#allocation13_spill] sm:$0xff]  ;;  %v1710_v26 = vld [vmem:[#allocation34_spill] sm:$0xff] }
  0x63   : > { %v793_v7 = vpop.eup %792  ;;  %539 = vst [vmem:[%s1360_s17 + $0x88] sm:$0xff] %v475_v59  ;;  %v477_v3 = vmul.f32 %v413_v61, %v1192_v37  ;;  %v415_v23 = vmul.f32 0.5, %v351_v30  ;;  %v353_v32 = vadd.f32 1.0, %v791_v39  ;;  %812 = vtanh.f32 %v1291_v15  ;;  %v1711_v59 = vld [vmem:[#allocation14_spill] sm:$0xff] }
  0x64   : > { %v795_v40 = vpop.eup %794  ;;  %540 = vst [vmem:[%s1360_s17 + $0x90] sm:$0xff] %v476_v63  ;;  %v478_v4 = vmul.f32 %v414_v17, %v1195_v38  ;;  %v416_v54 = vmul.f32 0.5, %v352_v31  ;;  %v354_v36 = vadd.f32 1.0, %v793_v7  ;;  %814 = vtanh.f32 %v1294_v16  ;;  %v1700_v16 = vld [vmem:[#allocation8_spill] sm:$0xff]  ;;  %v1712_v17 = vld [vmem:[#allocation15_spill] sm:$0xff] }
  0x65   : > { %v797_v8 = vpop.eup %796  ;;  %541 = vst [vmem:[%s1360_s17 + $0x98] sm:$0xff] %v477_v3  ;;  %v479_v11 = vmul.f32 %v415_v23, %v1207_v42  ;;  %v417_v50 = vmul.f32 0.5, %v353_v32  ;;  %v355_v37 = vadd.f32 1.0, %v795_v40  ;;  %816 = vtanh.f32 %v1306_v21  ;;  %v1702_v21 = vld [vmem:[#allocation9_spill] sm:$0xff]  ;;  %v1713_v40 = vld [vmem:[#allocation16_spill] sm:$0xff] }
  0x66   : > { %v799_v41 = vpop.eup %798  ;;  %542 = vst [vmem:[%s1360_s17 + $0xa0] sm:$0xff] %v478_v4  ;;  %v480_v15 = vmul.f32 %v416_v54, %v1210_v43  ;;  %v418_v28 = vmul.f32 0.5, %v354_v36  ;;  %v356_v38 = vadd.f32 1.0, %v797_v8  ;;  %818 = vtanh.f32 %v1699_v12  ;;  %v1715_v12 = vld [vmem:[#allocation18_spill] sm:$0xff] }
  0x67   : > { %v801_v48 = vpop.eup %800  ;;  %543 = vst [vmem:[%s1360_s17 + $0xa8] sm:$0xff] %v479_v11  ;;  %v481_v45 = vmul.f32 %v417_v50, %v1700_v16  ;;  %v419_v5 = vmul.f32 0.5, %v355_v37  ;;  %v357_v42 = vadd.f32 1.0, %v799_v41  ;;  %820 = vtanh.f32 %v1701_v13  ;;  %v1714_v50 = vld [vmem:[#allocation17_spill] sm:$0xff] }
  0x68   : > { %v803_v0 = vpop.eup %802  ;;  %544 = vst [vmem:[%s1360_s17 + $0xb0] sm:$0xff] %v480_v15  ;;  %v482_v46 = vmul.f32 %v418_v28, %v1702_v21  ;;  %v420_v29 = vmul.f32 0.5, %v356_v38  ;;  %v358_v43 = vadd.f32 1.0, %v801_v48  ;;  %822 = vtanh.f32 %v1703_v14  ;;  %v1464_v28 = vld [vmem:[%s1096_s30 + $0x180] sm:$0xff] }
  0x69   : > { %v805_v33 = vpop.eup %804  ;;  %545 = vst [vmem:[%s1360_s17 + $0xb8] sm:$0xff] %v481_v45  ;;  %v483_v1 = vmul.f32 %v419_v5, %v1704_v47  ;;  %v421_v18 = vmul.f32 0.5, %v357_v42  ;;  %v359_v44 = vadd.f32 1.0, %v803_v0  ;;  %824 = vtanh.f32 %v1705_v51  ;;  %v1716_v42 = vld [vmem:[#allocation19_spill] sm:$0xff]  ;;  %v1718_v51 = vld [vmem:[#allocation21_spill] sm:$0xff] }
  0x6a   : > { %v807_v34 = vpop.eup %806  ;;  %546 = vst [vmem:[%s1360_s17 + $0xc0] sm:$0xff] %v482_v46  ;;  %v484_v55 = vmul.f32 %v420_v29, %v1706_v19  ;;  %v422_v52 = vmul.f32 0.5, %v358_v43  ;;  %v360_v56 = vadd.f32 1.0, %v805_v33  ;;  %826 = vtanh.f32 %v1341_v60  ;;  %v1447_v60 = vld [vmem:[%s1096_s30 + $0x170] sm:$0xff]  ;;  %v1717_v43 = vld [vmem:[#allocation20_spill] sm:$0xff] }
  0x6b   : > { %v809_v20 = vpop.eup %808  ;;  %547 = vst [vmem:[%s1360_s17 + $0xc8] sm:$0xff] %v483_v1  ;;  %v485_v53 = vmul.f32 %v421_v18, %v1707_v62  ;;  %v423_v9 = vmul.f32 0.5, %v359_v44  ;;  %v361_v24 = vadd.f32 1.0, %v807_v34  ;;  %828 = vtanh.f32 %v1708_v2  ;;  %v1475_v18 = vld [vmem:[%s1096_s30 + $0x188] sm:$0xff]  ;;  %v1720_v2 = vld [vmem:[#allocation23_spill] sm:$0xff] }
  0x6c   : > { %v811_v10 = vpop.eup %810  ;;  %548 = vst [vmem:[%s1360_s17 + $0xd0] sm:$0xff] %v484_v55  ;;  %v486_v35 = vmul.f32 %v422_v52, %v1709_v25  ;;  %v424_v58 = vmul.f32 0.5, %v360_v56  ;;  %v362_v22 = vadd.f32 1.0, %v809_v20  ;;  %830 = vtanh.f32 %v1710_v26  ;;  %v1480_v52 = vld [vmem:[%s1096_s30 + $0x190] sm:$0xff] }
  0x6d   : > { %v813_v6 = vpop.eup %812  ;;  %549 = vst [vmem:[%s1360_s17 + $0xd8] sm:$0xff] %v485_v53  ;;  %v487_v61 = vmul.f32 %v423_v9, %v1711_v59  ;;  %v425_v30 = vmul.f32 0.5, %v361_v24  ;;  %v363_v39 = vadd.f32 1.0, %v811_v10  ;;  %832 = vtanh.f32 %v1352_v27  ;;  %v1459_v27 = vld [vmem:[%s1096_s30 + $0x178] sm:$0xff]  ;;  %v1719_v20 = vld [vmem:[#allocation22_spill] sm:$0xff] }
  0x6e   : > { %v815_v63 = vpop.eup %814  ;;  %550 = vst [vmem:[%s1360_s17 + $0xe0] sm:$0xff] %v486_v35  ;;  %v488_v31 = vmul.f32 %v424_v58, %v1712_v17  ;;  %v426_v7 = vmul.f32 0.5, %v362_v22  ;;  %v364_v3 = vadd.f32 1.0, %v813_v6  ;;  %v247_v23 = vmul.f32 0.5, %v1441_v57  ;;  %v1488_v22 = vld [vmem:[%s1096_s30 + $0x198] sm:$0xff]  ;;  %v1721_v6 = vld [vmem:[#allocation26_spill] sm:$0xff] }
  0x6f   : > { %v817_v32 = vpop.eup %816  ;;  %551 = vst [vmem:[%s1360_s17 + $0xe8] sm:$0xff] %v487_v61  ;;  %v489_v4 = vmul.f32 %v425_v30, %v1713_v40  ;;  %v427_v54 = vmul.f32 0.5, %v363_v39  ;;  %v365_v36 = vadd.f32 1.0, %v815_v63  ;;  %v248_v8 = vmul.f32 0.5, %v1447_v60  ;;  %v1494_v63 = vld [vmem:[%s1096_s30 + $0x1a0] sm:$0xff]  ;;  %v1497_v17 = vld [vmem:[%s1096_s30 + $0x1a8] sm:$0xff] }
  0x70   : > { %v819_v11 = vpop.eup %818  ;;  %552 = vst [vmem:[%s1360_s17 + $0xf0] sm:$0xff] %v488_v31  ;;  %v490_v37 = vmul.f32 %v426_v7, %v1714_v50  ;;  %v428_v41 = vmul.f32 0.5, %v364_v3  ;;  %v366_v15 = vadd.f32 1.0, %v817_v32  ;;  %834 = vtanh.f32 %v247_v23  ;;  %v1722_v31 = vld [vmem:[#allocation27_spill] sm:$0xff]  ;;  %v1502_v32 = vld [vmem:[%s1096_s30 + $0x1b0] sm:$0xff]  ;;  %v1723_v40 = vld [vmem:[#allocation28_spill] sm:$0xff] }
  0x71   : > { %v821_v38 = vpop.eup %820  ;;  %553 = vst [vmem:[%s1360_s17 + $0xf8] sm:$0xff] %v489_v4  ;;  %v491_v48 = vmul.f32 %v427_v54, %v1715_v12  ;;  %v429_v16 = vmul.f32 0.5, %v365_v36  ;;  %v367_v45 = vadd.f32 1.0, %v819_v11  ;;  %836 = vtanh.f32 %v248_v8  ;;  %v1508_v8 = vld [vmem:[%s1096_s30 + $0x1b8] sm:$0xff]  ;;  %v1515_v12 = vld [vmem:[%s1096_s30 + $0x1c0] sm:$0xff] }
  0x72   : > { %v823_v5 = vpop.eup %822  ;;  %554 = vst [vmem:[%s1360_s17 + $0x100] sm:$0xff] %v490_v37  ;;  %v492_v13 = vmul.f32 %v428_v41, %v1716_v42  ;;  %v430_v0 = vmul.f32 0.5, %v366_v15  ;;  %v368_v21 = vadd.f32 1.0, %v821_v38  ;;  %v249_v46 = vmul.f32 0.5, %v1459_v27  ;;  %v1724_v50 = vld [vmem:[#allocation31_spill] sm:$0xff] }
  0x73   : > { %v825_v29 = vpop.eup %824  ;;  %555 = vst [vmem:[%s1360_s17 + $0x108] sm:$0xff] %v491_v48  ;;  %v493_v14 = vmul.f32 %v429_v16, %v1717_v43  ;;  %v431_v33 = vmul.f32 0.5, %v367_v45  ;;  %v369_v47 = vadd.f32 1.0, %v823_v5  ;;  %v250_v1 = vmul.f32 0.5, %v1464_v28  ;;  %v1518_v48 = vld [vmem:[%s1096_s30 + $0x1c8] sm:$0xff]  ;;  %v1725_v45 = vld [vmem:[#allocation32_spill] sm:$0xff] }
  0x74   : > { %v827_v44 = vpop.eup %826  ;;  %556 = vst [vmem:[%s1360_s17 + $0x110] sm:$0xff] %v492_v13  ;;  %v494_v34 = vmul.f32 %v430_v0, %v1718_v51  ;;  %v432_v19 = vmul.f32 0.5, %v368_v21  ;;  %v370_v55 = vadd.f32 1.0, %v825_v29  ;;  %838 = vtanh.f32 %v249_v46  ;;  %v1524_v0 = vld [vmem:[%s1096_s30 + $0x1d0] sm:$0xff]  ;;  %v1530_v43 = vld [vmem:[%s1096_s30 + $0x1d8] sm:$0xff] }
  0x75   : > { %v829_v56 = vpop.eup %828  ;;  %557 = vst [vmem:[%s1360_s17 + $0x118] sm:$0xff] %v493_v14  ;;  %v495_v62 = vmul.f32 %v431_v33, %v1719_v20  ;;  %v433_v53 = vmul.f32 0.5, %v369_v47  ;;  %v371_v9 = vadd.f32 1.0, %v827_v44  ;;  %840 = vtanh.f32 %v250_v1  ;;  %v1536_v1 = vld [vmem:[%s1096_s30 + $0x1e0] sm:$0xff] }
  0x76   : > { %v831_v24 = vpop.eup %830  ;;  %558 = vst [vmem:[%s1360_s17 + $0x120] sm:$0xff] %v494_v34  ;;  %v496_v10 = vmul.f32 %v432_v19, %v1720_v2  ;;  %v434_v25 = vmul.f32 0.5, %v370_v55  ;;  %v372_v35 = vadd.f32 1.0, %v829_v56  ;;  %v251_v58 = vmul.f32 0.5, %v1475_v18  ;;  %v1541_v34 = vld [vmem:[%s1096_s30 + $0x1e8] sm:$0xff]  ;;  %v1551_v2 = vld [vmem:[%s1096_s30 + $0x1f8] sm:$0xff] }
  0x77   : > { %v833_v26 = vpop.eup %832  ;;  %559 = vst [vmem:[%s1360_s17 + $0x128] sm:$0xff] %v495_v62  ;;  %v497_v59 = vmul.f32 %v433_v53, %v1721_v6  ;;  %v435_v61 = vmul.f32 0.5, %v371_v9  ;;  %v373_v30 = vadd.f32 1.0, %v831_v24  ;;  %v252_v39 = vmul.f32 0.5, %v1480_v52  ;;  %v1546_v62 = vld [vmem:[%s1096_s30 + $0x1f0] sm:$0xff] }
  0x78   : > { %560 = vst [vmem:[%s1360_s17 + $0x130] sm:$0xff] %v496_v10  ;;  %v498_v7 = vmul.f32 %v434_v25, %v1722_v31  ;;  %v436_v3 = vmul.f32 0.5, %v372_v35  ;;  %v374_v23 = vadd.f32 1.0, %v833_v26  ;;  %842 = vtanh.f32 %v251_v58 }
  0x79   : > { %561 = vst [vmem:[%s1360_s17 + $0x138] sm:$0xff] %v497_v59  ;;  %v499_v4 = vmul.f32 %v435_v61, %v1723_v40  ;;  %v437_v54 = vmul.f32 0.5, %v373_v30  ;;  %844 = vtanh.f32 %v252_v39  ;;  %v253_v36 = vmul.f32 0.5, %v1488_v22 }
  0x7a   : > { %v835_v11 = vpop.eup %834  ;;  %562 = vst [vmem:[%s1360_s17 + $0x140] sm:$0xff] %v498_v7  ;;  %v500_v37 = vmul.f32 %v436_v3, %v1724_v50  ;;  %v438_v41 = vmul.f32 0.5, %v374_v23  ;;  %v254_v15 = vmul.f32 0.5, %v1494_v63  ;;  %v255_v38 = vmul.f32 0.5, %v1497_v17 }
  0x7b   : > { %v837_v16 = vpop.eup %836  ;;  %563 = vst [vmem:[%s1360_s17 + $0x148] sm:$0xff] %v499_v4  ;;  %v501_v5 = vmul.f32 %v437_v54, %v1725_v45  ;;  %v375_v42 = vadd.f32 1.0, %v835_v11  ;;  %846 = vtanh.f32 %v253_v36  ;;  %v256_v13 = vmul.f32 0.5, %v1502_v32 }
  0x7c   : > { %564 = vst [vmem:[%s1360_s17 + $0x150] sm:$0xff] %v500_v37  ;;  %v502_v21 = vmul.f32 %v438_v41, %v1337_v49  ;;  %v376_v46 = vadd.f32 1.0, %v837_v16  ;;  %848 = vtanh.f32 %v254_v15  ;;  %v257_v29 = vmul.f32 0.5, %v1508_v8 }
  0x7d   : > { %565 = vst [vmem:[%s1360_s17 + $0x158] sm:$0xff] %v501_v5  ;;  %v439_v14 = vmul.f32 0.5, %v375_v42  ;;  %850 = vtanh.f32 %v255_v38  ;;  %v258_v33 = vmul.f32 0.5, %v1515_v12  ;;  %v259_v47 = vmul.f32 0.5, %v1518_v48 }
  0x7e   : > { %v839_v44 = vpop.eup %838  ;;  %566 = vst [vmem:[%s1360_s17 + $0x160] sm:$0xff] %v502_v21  ;;  %v440_v49 = vmul.f32 0.5, %v376_v46  ;;  %852 = vtanh.f32 %v256_v13  ;;  %v260_v51 = vmul.f32 0.5, %v1524_v0  ;;  %v261_v20 = vmul.f32 0.5, %v1530_v43 }
  0x7f   : > { %v841_v19 = vpop.eup %840  ;;  %v503_v55 = vmul.f32 %v439_v14, %v1441_v57  ;;  %v377_v56 = vadd.f32 1.0, %v839_v44  ;;  %854 = vtanh.f32 %v257_v29  ;;  %v262_v24 = vmul.f32 0.5, %v1536_v1 }
  0x80   : > { %v504_v53 = vmul.f32 %v440_v49, %v1447_v60  ;;  %v378_v9 = vadd.f32 1.0, %v841_v19  ;;  %856 = vtanh.f32 %v258_v33  ;;  %v263_v57 = vmul.f32 0.5, %v1541_v34 }
  0x81   : > { %567 = vst [vmem:[%s1360_s17 + $0x168] sm:$0xff] %v503_v55  ;;  %v441_v10 = vmul.f32 0.5, %v377_v56  ;;  %858 = vtanh.f32 %v259_v47  ;;  %v264_v58 = vmul.f32 0.5, %v1546_v62  ;;  %v265_v59 = vmul.f32 0.5, %v1551_v2 }
  0x82   : > { %v843_v25 = vpop.eup %842  ;;  %568 = vst [vmem:[%s1360_s17 + $0x170] sm:$0xff] %v504_v53  ;;  %v442_v35 = vmul.f32 0.5, %v378_v9  ;;  %860 = vtanh.f32 %v260_v51 }
  0x83   : > { %v845_v60 = vpop.eup %844  ;;  %v505_v26 = vmul.f32 %v441_v10, %v1459_v27  ;;  %v379_v6 = vadd.f32 1.0, %v843_v25  ;;  %862 = vtanh.f32 %v261_v20 }
  0x84   : > { %v506_v61 = vmul.f32 %v442_v35, %v1464_v28  ;;  %v380_v30 = vadd.f32 1.0, %v845_v60  ;;  %864 = vtanh.f32 %v262_v24 }
  0x85   : > { %v847_v39 = vpop.eup %846  ;;  %569 = vst [vmem:[%s1360_s17 + $0x178] sm:$0xff] %v505_v26  ;;  %v443_v31 = vmul.f32 0.5, %v379_v6  ;;  %866 = vtanh.f32 %v263_v57 }
  0x86   : > { %v849_v7 = vpop.eup %848  ;;  %570 = vst [vmem:[%s1360_s17 + $0x180] sm:$0xff] %v506_v61  ;;  %v444_v3 = vmul.f32 0.5, %v380_v30  ;;  %v381_v23 = vadd.f32 1.0, %v847_v39  ;;  %868 = vtanh.f32 %v264_v58 }
  0x87   : > { %v851_v27 = vpop.eup %850  ;;  %v507_v40 = vmul.f32 %v443_v31, %v1475_v18  ;;  %v382_v4 = vadd.f32 1.0, %v849_v7  ;;  %870 = vtanh.f32 %v265_v59 }
  0x88   : > { %v853_v54 = vpop.eup %852  ;;  %v508_v28 = vmul.f32 %v444_v3, %v1480_v52  ;;  %v445_v36 = vmul.f32 0.5, %v381_v23  ;;  %v383_v11 = vadd.f32 1.0, %v851_v27 }
  0x89   : > { %v855_v50 = vpop.eup %854  ;;  %571 = vst [vmem:[%s1360_s17 + $0x188] sm:$0xff] %v507_v40  ;;  %v446_v37 = vmul.f32 0.5, %v382_v4  ;;  %v384_v41 = vadd.f32 1.0, %v853_v54 }
  0x8a   : > { %v857_v15 = vpop.eup %856  ;;  %572 = vst [vmem:[%s1360_s17 + $0x190] sm:$0xff] %v508_v28  ;;  %v509_v38 = vmul.f32 %v445_v36, %v1488_v22  ;;  %v447_v16 = vmul.f32 0.5, %v383_v11  ;;  %v385_v45 = vadd.f32 1.0, %v855_v50 }
  0x8b   : > { %v859_v18 = vpop.eup %858  ;;  %v510_v5 = vmul.f32 %v446_v37, %v1494_v63  ;;  %v448_v42 = vmul.f32 0.5, %v384_v41  ;;  %v386_v52 = vadd.f32 1.0, %v857_v15 }
  0x8c   : > { %v861_v13 = vpop.eup %860  ;;  %573 = vst [vmem:[%s1360_s17 + $0x198] sm:$0xff] %v509_v38  ;;  %v511_v21 = vmul.f32 %v447_v16, %v1497_v17  ;;  %v449_v46 = vmul.f32 0.5, %v385_v45  ;;  %v387_v29 = vadd.f32 1.0, %v859_v18 }
  0x8d   : > { %v863_v14 = vpop.eup %862  ;;  %574 = vst [vmem:[%s1360_s17 + $0x1a0] sm:$0xff] %v510_v5  ;;  %v512_v22 = vmul.f32 %v448_v42, %v1502_v32  ;;  %v450_v33 = vmul.f32 0.5, %v386_v52  ;;  %v388_v47 = vadd.f32 1.0, %v861_v13 }
  0x8e   : > { %v865_v44 = vpop.eup %864  ;;  %575 = vst [vmem:[%s1360_s17 + $0x1a8] sm:$0xff] %v511_v21  ;;  %v513_v63 = vmul.f32 %v449_v46, %v1508_v8  ;;  %v451_v49 = vmul.f32 0.5, %v387_v29  ;;  %v389_v51 = vadd.f32 1.0, %v863_v14 }
  0x8f   : > { %v867_v19 = vpop.eup %866  ;;  %576 = vst [vmem:[%s1360_s17 + $0x1b0] sm:$0xff] %v512_v22  ;;  %v514_v17 = vmul.f32 %v450_v33, %v1515_v12  ;;  %v452_v55 = vmul.f32 0.5, %v388_v47  ;;  %v390_v56 = vadd.f32 1.0, %v865_v44 }
  0x90   : > { %v869_v20 = vpop.eup %868  ;;  %577 = vst [vmem:[%s1360_s17 + $0x1b8] sm:$0xff] %v513_v63  ;;  %v515_v32 = vmul.f32 %v451_v49, %v1518_v48  ;;  %v453_v53 = vmul.f32 0.5, %v389_v51  ;;  %v391_v9 = vadd.f32 1.0, %v867_v19 }
  0x91   : > { %v871_v8 = vpop.eup %870  ;;  %578 = vst [vmem:[%s1360_s17 + $0x1c0] sm:$0xff] %v514_v17  ;;  %v516_v24 = vmul.f32 %v452_v55, %v1524_v0  ;;  %v454_v10 = vmul.f32 0.5, %v390_v56  ;;  %v392_v57 = vadd.f32 1.0, %v869_v20 }
  0x92   : > { %579 = vst [vmem:[%s1360_s17 + $0x1c8] sm:$0xff] %v515_v32  ;;  %v517_v12 = vmul.f32 %v453_v53, %v1530_v43  ;;  %v455_v25 = vmul.f32 0.5, %v391_v9  ;;  %v393_v35 = vadd.f32 1.0, %v871_v8 }
  0x93   : > { %580 = vst [vmem:[%s1360_s17 + $0x1d0] sm:$0xff] %v516_v24  ;;  %v518_v48 = vmul.f32 %v454_v10, %v1536_v1  ;;  %v456_v58 = vmul.f32 0.5, %v392_v57 }
  0x94   : > { %581 = vst [vmem:[%s1360_s17 + $0x1d8] sm:$0xff] %v517_v12  ;;  %v519_v0 = vmul.f32 %v455_v25, %v1541_v34  ;;  %v457_v60 = vmul.f32 0.5, %v393_v35 }
  0x95   : > { %582 = vst [vmem:[%s1360_s17 + $0x1e0] sm:$0xff] %v518_v48  ;;  %v520_v26 = vmul.f32 %v456_v58, %v1546_v62 }
  0x96   : > { %583 = vst [vmem:[%s1360_s17 + $0x1e8] sm:$0xff] %v519_v0  ;;  %v521_v43 = vmul.f32 %v457_v60, %v1551_v2 }
  0x97   : > { %584 = vst [vmem:[%s1360_s17 + $0x1f0] sm:$0xff] %v520_v26 }
  0x98   : > { %585 = vst [vmem:[%s1360_s17 + $0x1f8] sm:$0xff] %v521_v43 }
  0x99   : > { %915 = shalt.err (!%p912_p2)
}
  0x9a   : > { %s916_s13 = scalar_lea.hbm %s1593_s2, 8192  ;;  %s920_s20 = scalar_lea.hbm %s1644_s1, 16384 }
  0x9b   : > { %p917_p4 = scmp.ne.s32.totalorder %s1593_s2, %s916_s13  ;;  %p921_p9 = scmp.lt.u32.totalorder %s1593_s2, %s1644_s1 }
  0x9c   : > { %p922_p1 = scmp.lt.u32.totalorder %s920_s20, %s916_s13  ;;  %p924_p6 = scmp.lt.u32.totalorder %s916_s13, %s1593_s2 }
  0x9d   : > { %p918_p5 = pnand %p917_p4, %p1726_p11 }
  0x9e   : > { %p923_p3 = por %p922_p1, %p921_p9 }
  0x9f   : > { %p919_p7 = pneg %p918_p5 }
  0xa0   : > { %p925_p12 = por %p924_p6, %p923_p3 }
  0xa2   : > { %p926_p13 = pnand %p925_p12, %p919_p7 }
  0xa4   : > { %929 = shalt.err (!%p926_p13)
}
  0xa5   : > { %s974_s24 = smov 4096   ;;  %s975_s26 = smov 256  }
  0xa6   : > { %696 = dma.vmem_to_hbm [thread:$0]  (%p1726_p11), %s1595_s27, 8192, %s1593_s2, %s587_s10, %s974_s24, %s974_s24, %s975_s26  }
  0xa7 PF: > { %s616_s30 = sand.u32 1, %s956_s6   ;;  %p1727_p8 = scmp.ne.s32.totalorder %s1670_s19, 0 }
  0xa8   : > { %p1728_p10 = scmp.ge.s32.totalorder %s968_s9, 2  ;;  %s617_s17 = scalar_lea.sflag [#allocation4], %s616_s30 }
  0xaa   : > { %p703_p0 = pnand %p1728_p10, %p1727_p8 }
  0xac   : > { %951 = dma.done.wait (!%p703_p0), %s617_s17, 8192  }
  0xad   : > { %953 = vsyncadd (!%p703_p0), %s617_s17, 4294959104  ;;  %p14_p2 = scmp.ge.s32.totalorder %s1011_s12, 4   ;;  %s1729_s6 = smov %s960_s7 }
  0xae   : > { %s1730_s7 = smov %s964_s8  ;;  %s1731_s8 = smov %s1023_s15 }
  0xaf   : > { %s1732_s9 = smov %s1011_s12  ;;  %16 = sbr.rel (!%p14_p2) target bundleno = 5 (0x5), region = 69 }
  0xb6   :  { %622 = vsyncpa [#allocation3], 1 }
  0xb7   :  { %624 = vsyncpa [#allocation3 + $0x1], 1 }
  0xb8   :  { %625 = vsyncpa [#allocation4], 1 }
  0xb9   :  { %627 = vsyncpa [#allocation4 + $0x1], 1 }

</bundles_post_ra>
